<compile_context>
chip_gen: v7x
topology: tpu7x:2x2x1
jax: 0.10.0
libtpu: 0.0.40
codegen_flags: <defaults>
</compile_context>

<pallas_src>
import math
import jax
import jax.numpy as jnp
from jax.experimental import pallas as pl
from jax.experimental.pallas import tpu as pltpu

# ---- static configuration (shapes from the PyTorch module __init__) ----
INPUT_DIM = 400
H1, H2, H3 = 256, 128, 32
N_CLASS = 2

K1_PAD = 512        # layer-1 contraction padded to a multiple of 128
OUT_PAD = 128       # lane-dense output block; real logits are columns [:N_CLASS]
PREF_TILE_B = 1024  # preferred batch tile (clamped to the actual padded batch)


def _round_up(n, m):
    return ((n + m - 1) // m) * m


# ---------------------------------------------------------------------------
# Fused MLP kernel (one batch tile per grid step, weights VMEM-resident).
# ---------------------------------------------------------------------------
def _simple_fc_kernel(x_ref, w1T_ref, b1_ref, w2T_ref, b2_ref,
                      w3T_ref, b3_ref, w4T_ref, b4_ref, o_ref):
    # bf16 MXU matmuls with f32 accumulation; bias + ReLU in f32 on the VPU.
    h = jnp.dot(x_ref[...], w1T_ref[...], preferred_element_type=jnp.float32)
    h = jnp.maximum(h + b1_ref[...], 0.0).astype(jnp.bfloat16)
    h = jnp.dot(h, w2T_ref[...], preferred_element_type=jnp.float32)
    h = jnp.maximum(h + b2_ref[...], 0.0).astype(jnp.bfloat16)
    h = jnp.dot(h, w3T_ref[...], preferred_element_type=jnp.float32)
    h = jnp.maximum(h + b3_ref[...], 0.0).astype(jnp.bfloat16)
    o_ref[...] = (jnp.dot(h, w4T_ref[...], preferred_element_type=jnp.float32)
                  + b4_ref[...])


def simple_fc(x, params):
    n = x.shape[0]
    tile_b = min(PREF_TILE_B, _round_up(n, 8))
    n_pad = _round_up(n, tile_b)

    # Pad batch to a multiple of the tile and the feature dim 400 -> 512.
    xp = jnp.zeros((n_pad, K1_PAD), jnp.bfloat16)
    xp = xp.at[:n, :INPUT_DIM].set(x.astype(jnp.bfloat16))

    w_args = (params["w1T"], params["b1"], params["w2T"], params["b2"],
              params["w3T"], params["b3"], params["w4T"], params["b4"])

    def resident(a):  # full-array block, constant index -> DMA'd once, stays in VMEM
        return pl.BlockSpec(a.shape, lambda i: (0,) * a.ndim)

    out = pl.pallas_call(
        _simple_fc_kernel,
        out_shape=jax.ShapeDtypeStruct((n_pad, OUT_PAD), jnp.float32),
        grid=(n_pad // tile_b,),
        in_specs=[pl.BlockSpec((tile_b, K1_PAD), lambda i: (i, 0))]
                 + [resident(a) for a in w_args],
        out_specs=pl.BlockSpec((tile_b, OUT_PAD), lambda i: (i, 0)),
        compiler_params=pltpu.CompilerParams(
            dimension_semantics=("parallel",),
            vmem_limit_bytes=32 * 1024 * 1024),
    )(xp, *w_args)
    return out[:n, :N_CLASS]


# ---------------------------------------------------------------------------
# Parameter init (matches nn.Linear's U(-1/sqrt(fan_in), +) init).
# Kernel params: pre-transposed, bf16, padded (K1_PAD rows for layer 1,
# OUT_PAD output lanes for layer 4).  Reference params: the same
# bf16-rounded weights cast back to f32, unpadded.
# ---------------------------------------------------------------------------
def init_params(key):
    layer_dims = [(INPUT_DIM, H1), (H1, H2), (H2, H3), (H3, N_CLASS)]
    keys = jax.random.split(key, 2 * len(layer_dims))
    ws, bs = [], []
    for i, (fan_in, fan_out) in enumerate(layer_dims):
        bound = 1.0 / math.sqrt(fan_in)
        ws.append(jax.random.uniform(keys[2 * i], (fan_out, fan_in), jnp.float32,
                                     minval=-bound, maxval=bound))
        bs.append(jax.random.uniform(keys[2 * i + 1], (fan_out,), jnp.float32,
                                     minval=-bound, maxval=bound))

    w1T_bf = ws[0].T.astype(jnp.bfloat16)                      # (400, 256)
    w2T_bf = ws[1].T.astype(jnp.bfloat16)                      # (256, 128)
    w3T_bf = ws[2].T.astype(jnp.bfloat16)                      # (128, 32)
    w4T_bf = ws[3].T.astype(jnp.bfloat16)                      # (32, 2)

    params = {
        "w1T": jnp.zeros((K1_PAD, H1), jnp.bfloat16).at[:INPUT_DIM].set(w1T_bf),
        "b1": bs[0].reshape(1, H1),
        "w2T": w2T_bf,
        "b2": bs[1].reshape(1, H2),
        "w3T": w3T_bf,
        "b3": bs[2].reshape(1, H3),
        "w4T": jnp.zeros((H3, OUT_PAD), jnp.bfloat16).at[:, :N_CLASS].set(w4T_bf),
        "b4": jnp.zeros((1, OUT_PAD), jnp.float32).at[:, :N_CLASS].set(
            bs[3].reshape(1, N_CLASS)),
    }
    ref_params = {
        "w1T": w1T_bf.astype(jnp.float32), "b1": bs[0].reshape(1, H1),
        "w2T": w2T_bf.astype(jnp.float32), "b2": bs[1].reshape(1, H2),
        "w3T": w3T_bf.astype(jnp.float32), "b3": bs[2].reshape(1, H3),
        "w4T": w4T_bf.astype(jnp.float32), "b4": bs[3].reshape(1, N_CLASS),
    }
    return params, ref_params


# ---------------------------------------------------------------------------
# Pure-JAX reference for correctness checking (same bf16-rounded weights/input,
# f32 activations throughout).
# ---------------------------------------------------------------------------
def reference(x, rp):
    h = x.astype(jnp.bfloat16).astype(jnp.float32)
    h = jnp.maximum(h @ rp["w1T"] + rp["b1"], 0.0)
    h = jnp.maximum(h @ rp["w2T"] + rp["b2"], 0.0)
    h = jnp.maximum(h @ rp["w3T"] + rp["b3"], 0.0)
    return h @ rp["w4T"] + rp["b4"]


if __name__ == "__main__":
    key = jax.random.PRNGKey(0)
    k_x, k_p = jax.random.split(key)
    params, ref_params = init_params(k_p)

    # Primary small-shape check (B=2) plus a multi-tile / ragged-batch check.
    for B in (2, 2500):
        kx = jax.random.fold_in(k_x, B)
        x = jax.random.normal(kx, (B, INPUT_DIM), jnp.float32)

        out = jax.block_until_ready(simple_fc(x, params))
        assert out.shape == (B, N_CLASS), out.shape
        assert bool(jnp.all(jnp.isfinite(out)))

        ref = jax.block_until_ready(reference(x, ref_params))
        max_err = float(jnp.max(jnp.abs(out - ref)))
        assert bool(jnp.allclose(out, ref, atol=3e-2, rtol=3e-2)), max_err

    print("KERNEL_OK")
</pallas_src>

<mosaic_0001>
module attributes {stable_mosaic.version = 11 : i64} {
  func.func @_simple_fc_kernel(%arg0: i32, %arg1: memref<8x512xbf16, #tpu.memory_space<vmem>>, %arg2: memref<512x256xbf16, #tpu.memory_space<vmem>>, %arg3: memref<1x256xf32, #tpu.memory_space<vmem>>, %arg4: memref<256x128xbf16, #tpu.memory_space<vmem>>, %arg5: memref<1x128xf32, #tpu.memory_space<vmem>>, %arg6: memref<128x32xbf16, #tpu.memory_space<vmem>>, %arg7: memref<1x32xf32, #tpu.memory_space<vmem>>, %arg8: memref<32x128xbf16, #tpu.memory_space<vmem>>, %arg9: memref<1x128xf32, #tpu.memory_space<vmem>>, %arg10: memref<8x128xf32, #tpu.memory_space<vmem>>) attributes {dimension_semantics = [#tpu.dimension_semantics<parallel>], iteration_bounds = array<i64: 1>, scalar_prefetch = 0 : i64, scratch_operands = 0 : i64, tpu.core_type = #tpu.core_type<tc>, window_params = [{transform_indices = @transform_0, window_bounds = array<i64: 8, 512>}, {pipeline_mode = #tpu.pipeline_mode<synchronous>, transform_indices = @transform_1, window_bounds = array<i64: 512, 256>}, {pipeline_mode = #tpu.pipeline_mode<synchronous>, transform_indices = @transform_2, window_bounds = array<i64: 1, 256>}, {pipeline_mode = #tpu.pipeline_mode<synchronous>, transform_indices = @transform_3, window_bounds = array<i64: 256, 128>}, {pipeline_mode = #tpu.pipeline_mode<synchronous>, transform_indices = @transform_4, window_bounds = array<i64: 1, 128>}, {pipeline_mode = #tpu.pipeline_mode<synchronous>, transform_indices = @transform_5, window_bounds = array<i64: 128, 32>}, {pipeline_mode = #tpu.pipeline_mode<synchronous>, transform_indices = @transform_6, window_bounds = array<i64: 1, 32>}, {pipeline_mode = #tpu.pipeline_mode<synchronous>, transform_indices = @transform_7, window_bounds = array<i64: 32, 128>}, {pipeline_mode = #tpu.pipeline_mode<synchronous>, transform_indices = @transform_8, window_bounds = array<i64: 1, 128>}, {transform_indices = @transform_9, window_bounds = array<i64: 8, 128>}]} {
    %c0 = arith.constant 0 : index
    %c0_0 = arith.constant 0 : index
    %0 = vector.load %arg1[%c0, %c0_0] : memref<8x512xbf16, #tpu.memory_space<vmem>>, vector<8x512xbf16>
    %c0_1 = arith.constant 0 : index
    %c0_2 = arith.constant 0 : index
    %1 = vector.load %arg2[%c0_1, %c0_2] : memref<512x256xbf16, #tpu.memory_space<vmem>>, vector<512x256xbf16>
    %cst = arith.constant dense<0.000000e+00> : vector<8x256xf32>
    %2 = tpu.matmul %0, %1, %cst {dimension_numbers = #tpu.dot_dimension_numbers<[1], [0], [0], [1], [0, 0, 1, 1], [], []>} : vector<8x512xbf16>, vector<512x256xbf16>, vector<8x256xf32> -> vector<8x256xf32>
    %c0_3 = arith.constant 0 : index
    %c0_4 = arith.constant 0 : index
    %3 = vector.load %arg3[%c0_3, %c0_4] : memref<1x256xf32, #tpu.memory_space<vmem>>, vector<1x256xf32>
    %4 = vector.broadcast %3 : vector<1x256xf32> to vector<8x256xf32>
    %5 = arith.addf %2, %4 : vector<8x256xf32>
    %cst_5 = arith.constant 0.000000e+00 : f32
    %6 = vector.broadcast %cst_5 : f32 to vector<8x256xf32>
    %7 = arith.maximumf %5, %6 : vector<8x256xf32>
    %8 = arith.truncf %7 : vector<8x256xf32> to vector<8x256xbf16>
    %c0_6 = arith.constant 0 : index
    %c0_7 = arith.constant 0 : index
    %9 = vector.load %arg4[%c0_6, %c0_7] : memref<256x128xbf16, #tpu.memory_space<vmem>>, vector<256x128xbf16>
    %cst_8 = arith.constant dense<0.000000e+00> : vector<8x128xf32>
    %10 = tpu.matmul %8, %9, %cst_8 {dimension_numbers = #tpu.dot_dimension_numbers<[1], [0], [0], [1], [0, 0, 1, 1], [], []>} : vector<8x256xbf16>, vector<256x128xbf16>, vector<8x128xf32> -> vector<8x128xf32>
    %c0_9 = arith.constant 0 : index
    %c0_10 = arith.constant 0 : index
    %11 = vector.load %arg5[%c0_9, %c0_10] : memref<1x128xf32, #tpu.memory_space<vmem>>, vector<1x128xf32>
    %12 = vector.broadcast %11 : vector<1x128xf32> to vector<8x128xf32>
    %13 = arith.addf %10, %12 : vector<8x128xf32>
    %cst_11 = arith.constant 0.000000e+00 : f32
    %14 = vector.broadcast %cst_11 : f32 to vector<8x128xf32>
    %15 = arith.maximumf %13, %14 : vector<8x128xf32>
    %16 = arith.truncf %15 : vector<8x128xf32> to vector<8x128xbf16>
    %c0_12 = arith.constant 0 : index
    %c0_13 = arith.constant 0 : index
    %17 = vector.load %arg6[%c0_12, %c0_13] : memref<128x32xbf16, #tpu.memory_space<vmem>>, vector<128x32xbf16>
    %cst_14 = arith.constant dense<0.000000e+00> : vector<8x32xf32>
    %18 = tpu.matmul %16, %17, %cst_14 {dimension_numbers = #tpu.dot_dimension_numbers<[1], [0], [0], [1], [0, 0, 1, 1], [], []>} : vector<8x128xbf16>, vector<128x32xbf16>, vector<8x32xf32> -> vector<8x32xf32>
    %c0_15 = arith.constant 0 : index
    %c0_16 = arith.constant 0 : index
    %19 = vector.load %arg7[%c0_15, %c0_16] : memref<1x32xf32, #tpu.memory_space<vmem>>, vector<1x32xf32>
    %20 = vector.broadcast %19 : vector<1x32xf32> to vector<8x32xf32>
    %21 = arith.addf %18, %20 : vector<8x32xf32>
    %cst_17 = arith.constant 0.000000e+00 : f32
    %22 = vector.broadcast %cst_17 : f32 to vector<8x32xf32>
    %23 = arith.maximumf %21, %22 : vector<8x32xf32>
    %24 = arith.truncf %23 : vector<8x32xf32> to vector<8x32xbf16>
    %c0_18 = arith.constant 0 : index
    %c0_19 = arith.constant 0 : index
    %25 = vector.load %arg8[%c0_18, %c0_19] : memref<32x128xbf16, #tpu.memory_space<vmem>>, vector<32x128xbf16>
    %cst_20 = arith.constant dense<0.000000e+00> : vector<8x128xf32>
    %26 = tpu.matmul %24, %25, %cst_20 {dimension_numbers = #tpu.dot_dimension_numbers<[1], [0], [0], [1], [0, 0, 1, 1], [], []>} : vector<8x32xbf16>, vector<32x128xbf16>, vector<8x128xf32> -> vector<8x128xf32>
    %c0_21 = arith.constant 0 : index
    %c0_22 = arith.constant 0 : index
    %27 = vector.load %arg9[%c0_21, %c0_22] : memref<1x128xf32, #tpu.memory_space<vmem>>, vector<1x128xf32>
    %28 = vector.broadcast %27 : vector<1x128xf32> to vector<8x128xf32>
    %29 = arith.addf %26, %28 : vector<8x128xf32>
    %c0_23 = arith.constant 0 : index
    %c0_24 = arith.constant 0 : index
    %30 = vector.load %arg10[%c0_23, %c0_24] : memref<8x128xf32, #tpu.memory_space<vmem>>, vector<8x128xf32>
    tpu.vector_store %arg10[%c0_23, %c0_24], %29 {strides = array<i32>} : memref<8x128xf32, #tpu.memory_space<vmem>>, vector<8x128xf32>,
    return
  }
  func.func @transform_0(%arg0: i32) -> (i32, i32) {
    %c0_i32 = arith.constant 0 : i32
    %c0_i32_0 = arith.constant 0 : i32
    return %arg0, %c0_i32 : i32, i32
  }
  func.func @transform_1(%arg0: i32) -> (i32, i32) {
    %c0_i32 = arith.constant 0 : i32
    %c0_i32_0 = arith.constant 0 : i32
    %c0_i32_1 = arith.constant 0 : i32
    return %c0_i32, %c0_i32_0 : i32, i32
  }
  func.func @transform_2(%arg0: i32) -> (i32, i32) {
    %c0_i32 = arith.constant 0 : i32
    %c0_i32_0 = arith.constant 0 : i32
    %c0_i32_1 = arith.constant 0 : i32
    return %c0_i32, %c0_i32_0 : i32, i32
  }
  func.func @transform_3(%arg0: i32) -> (i32, i32) {
    %c0_i32 = arith.constant 0 : i32
    %c0_i32_0 = arith.constant 0 : i32
    %c0_i32_1 = arith.constant 0 : i32
    return %c0_i32, %c0_i32_0 : i32, i32
  }
  func.func @transform_4(%arg0: i32) -> (i32, i32) {
    %c0_i32 = arith.constant 0 : i32
    %c0_i32_0 = arith.constant 0 : i32
    %c0_i32_1 = arith.constant 0 : i32
    return %c0_i32, %c0_i32_0 : i32, i32
  }
  func.func @transform_5(%arg0: i32) -> (i32, i32) {
    %c0_i32 = arith.constant 0 : i32
    %c0_i32_0 = arith.constant 0 : i32
    %c0_i32_1 = arith.constant 0 : i32
    return %c0_i32, %c0_i32_0 : i32, i32
  }
  func.func @transform_6(%arg0: i32) -> (i32, i32) {
    %c0_i32 = arith.constant 0 : i32
    %c0_i32_0 = arith.constant 0 : i32
    %c0_i32_1 = arith.constant 0 : i32
    return %c0_i32, %c0_i32_0 : i32, i32
  }
  func.func @transform_7(%arg0: i32) -> (i32, i32) {
    %c0_i32 = arith.constant 0 : i32
    %c0_i32_0 = arith.constant 0 : i32
    %c0_i32_1 = arith.constant 0 : i32
    return %c0_i32, %c0_i32_0 : i32, i32
  }
  func.func @transform_8(%arg0: i32) -> (i32, i32) {
    %c0_i32 = arith.constant 0 : i32
    %c0_i32_0 = arith.constant 0 : i32
    %c0_i32_1 = arith.constant 0 : i32
    return %c0_i32, %c0_i32_0 : i32, i32
  }
  func.func @transform_9(%arg0: i32) -> (i32, i32) {
    %c0_i32 = arith.constant 0 : i32
    %c0_i32_0 = arith.constant 0 : i32
    return %arg0, %c0_i32 : i32, i32
  }
}

</mosaic_0001>

<bundles_post_ra>
// kernel: tpu_custom_call.1
= control target key start
LH: loop header
LB: loop body
LE: loop exit
PB: predicated region body
PF: predicated region fallthrough
CT: control target
= control target key end

     0   :  { %14 = vsyncpa [#allocation3], 0  ;;  %s1462_s0 = inlined_call_operand.vmem [shape: bf16[8,512], index: 0, kind: input, shape index: {}]   ;;  %s1463_s1 = inlined_call_operand.hbm [shape: bf16[512,256], index: 1, kind: input, shape index: {}]   ;;  %s1464_s2 = inlined_call_operand.vmem [shape: f32[1,256], index: 2, kind: input, shape index: {}]   ;;  %s1465_s3 = inlined_call_operand.hbm [shape: bf16[256,128], index: 3, kind: input, shape index: {}]   ;;  %s1466_s4 = inlined_call_operand.vmem [shape: f32[1,128], index: 4, kind: input, shape index: {}]   ;;  %s1467_s5 = inlined_call_operand.vmem [shape: bf16[128,32], index: 5, kind: input, shape index: {}]   ;;  %s1468_s6 = inlined_call_operand.vmem [shape: f32[1,32], index: 6, kind: input, shape index: {}]   ;;  %s1469_s7 = inlined_call_operand.vmem [shape: bf16[32,128], index: 7, kind: input, shape index: {}]   ;;  %s1470_s8 = inlined_call_operand.vmem [shape: f32[1,128], index: 8, kind: input, shape index: {}]   ;;  %s1471_s9 = inlined_call_operand.hbm [shape: f32[8,128], index: 9, kind: output, shape index: {}]  }
   0x1   :  { %15 = vsyncpa [#allocation6], 0 }
   0x2   :  { %16 = vsyncpa [#allocation4], 0  ;;  %s1307_s30 = smov [#allocation2]   ;;  %s1235_s13 = scalar_lea.hbm %s1463_s1, 8192 }
   0x3   :  { %s24_s10 = sshll.u32 %s1307_s30, 4  ;;  %p1236_p0 = scmp.ne.s32.totalorder %s1463_s1, %s1235_s13  ;;  %s25_s10 = int_to_ptr.vmem [resolvable:$true] %s24_s10 }
   0x4   :  { %p1239_p1 = scmp.lt.u32.totalorder %s1235_s13, %s1463_s1 }
   0x6   :  { %p1241_p2 = pnand %p1239_p1, %p1236_p0 }
   0x8   :  { %1244 = shalt.err (!%p1241_p2)
}
   0x9   :  { %s1245_s18 = scalar_lea.vmem %s25_s10, 8192  ;;  %p1250_p4 = scmp.lt.s32.totalorder %s25_s10, %s25_s10 }
   0xa   :  { %p1246_p3 = scmp.ne.s32.totalorder %s25_s10, %s1245_s18  ;;  %p1251_p5 = scmp.lt.s32.totalorder %s1245_s18, %s1245_s18 }
   0xc   :  { %p1252_p6 = por %p1251_p5, %p1250_p4 }
   0xe   :  { %p1253_p7 = pnand %p1252_p6, %p1246_p3 }
  0x10   :  { %1256 = shalt.err (!%p1253_p7)
}
  0x11   :  { %s1308_s19 = smov 128   ;;  %s1309_s20 = smov 8  }
  0x12   :  { %30 = dma.hbm_to_vmem [thread:$0]  %s1463_s1, 8192, %s25_s10, [#allocation3], %s1308_s19, %s1308_s19, %s1309_s20  }
  0x13   :  { %s1310_s23 = smov [#allocation5]   ;;  %s1257_s27 = scalar_lea.hbm %s1465_s3, 2048 }
  0x14   :  { %s38_s24 = sshll.u32 %s1310_s23, 4  ;;  %p1258_p8 = scmp.ne.s32.totalorder %s1465_s3, %s1257_s27  ;;  %s39_s24 = int_to_ptr.vmem [resolvable:$true] %s38_s24 }
  0x15   :  { %p1261_p9 = scmp.lt.u32.totalorder %s1257_s27, %s1465_s3 }
  0x17   :  { %p1263_p10 = pnand %p1261_p9, %p1258_p8 }
  0x19   :  { %1266 = shalt.err (!%p1263_p10)
}
  0x1a   :  { %s1267_s12 = scalar_lea.vmem %s39_s24, 2048  ;;  %p1272_p12 = scmp.lt.s32.totalorder %s39_s24, %s39_s24 }
  0x1b   :  { %p1268_p11 = scmp.ne.s32.totalorder %s39_s24, %s1267_s12  ;;  %p1273_p13 = scmp.lt.s32.totalorder %s1267_s12, %s1267_s12 }
  0x1d   :  { %p1274_p0 = por %p1273_p13, %p1272_p12 }
  0x1f   :  { %p1275_p1 = pnand %p1274_p0, %p1268_p11 }
  0x21   :  { %1278 = shalt.err (!%p1275_p1)
}
  0x22   :  { %s1311_s1 = smov 64   ;;  %s1312_s10 = smov 4  }
  0x23   :  { %44 = dma.hbm_to_vmem [thread:$0]  %s1465_s3, 2048, %s39_s24, [#allocation6], %s1311_s1, %s1311_s1, %s1312_s10  }
  0x24   :  { %1301 = dma.done.wait [#allocation3], 8192  }
  0x25   :  { %1302 = vsyncadd [#allocation3], 4294959104 }
  0x26   :  { %1303 = dma.done.wait [#allocation6], 2048  }
  0x27   :  { %1304 = vsyncadd [#allocation6], 4294965248  ;;  %v1109_v0 = vld [vmem:[#allocation2 + $0x4] ss:$8 sps:$4 sm:$0xff]   ;;  %v1111_v1 = vld [vmem:[#allocation2] ss:$8 sps:$4 sm:$0xff]  }
  0x28   :  { %474 = vmatprep.subr.bf16.mxu0 %v1109_v0  ;;  %v1112_v2 = vld [vmem:[#allocation2 + $0x14] ss:$8 sps:$4 sm:$0xff]   ;;  %v1114_v3 = vld [vmem:[#allocation2 + $0x10] ss:$8 sps:$4 sm:$0xff]   ;;  %v1115_v4 = vld [vmem:[#allocation2 + $0x24] ss:$8 sps:$4 sm:$0xff]  }
  0x29   :  { %475 = vmatpush1.bf16.msra.mxu0 %v1111_v1  ;;  %v1117_v5 = vld [vmem:[#allocation2 + $0x20] ss:$8 sps:$4 sm:$0xff]   ;;  %v1118_v6 = vld [vmem:[#allocation2 + $0x34] ss:$8 sps:$4 sm:$0xff]   ;;  %v1120_v7 = vld [vmem:[#allocation2 + $0x30] ss:$8 sps:$4 sm:$0xff]  }
  0x2a   :  { %476 = vmatprep.subr.bf16.mxu0 %v1112_v2  ;;  %v1121_v8 = vld [vmem:[#allocation2 + $0x44] ss:$8 sps:$4 sm:$0xff]   ;;  %v1123_v9 = vld [vmem:[#allocation2 + $0x40] ss:$8 sps:$4 sm:$0xff]   ;;  %v1124_v10 = vld [vmem:[#allocation2 + $0x54] ss:$8 sps:$4 sm:$0xff]  }
  0x2b   :  { %v1126_v11 = vld [vmem:[#allocation2 + $0x50] ss:$8 sps:$4 sm:$0xff]   ;;  %v1127_v12 = vld [vmem:[#allocation2 + $0x64] ss:$8 sps:$4 sm:$0xff]   ;;  %v1129_v15 = vld [vmem:[#allocation2 + $0x60] ss:$8 sps:$4 sm:$0xff]  }
  0x2c   :  { %v1393_v13 = vld [vmem:[%s1462_s0] sm:$0xff]  ;;  %v1130_v16 = vld [vmem:[#allocation2 + $0x74] ss:$8 sps:$4 sm:$0xff]   ;;  %v1132_v17 = vld [vmem:[#allocation2 + $0x70] ss:$8 sps:$4 sm:$0xff]   ;;  %vm1314_vm0 = vmmov 0  }
  0x2d   :  { %477 = vmatpush1.bf16.msra.mxu0 %v1114_v3  ;;  %v935_v14 = vcombine.high %v1393_v13, %v1393_v13  ;;  %v1133_v18 = vld [vmem:[#allocation2 + $0x84] ss:$8 sps:$4 sm:$0xff]   ;;  %v1135_v19 = vld [vmem:[#allocation2 + $0x80] ss:$8 sps:$4 sm:$0xff]   ;;  %v1136_v20 = vld [vmem:[#allocation2 + $0x94] ss:$8 sps:$4 sm:$0xff]   ;;  %v934_v48 = vcombine.low %v1393_v13, %v1393_v13 }
  0x2e   :  { %478 = vmatprep.subr.bf16.mxu0 %v1115_v4  ;;  %v1138_v21 = vld [vmem:[#allocation2 + $0x90] ss:$8 sps:$4 sm:$0xff]   ;;  %v1139_v22 = vld [vmem:[#allocation2 + $0xa4] ss:$8 sps:$4 sm:$0xff]   ;;  %v1141_v23 = vld [vmem:[#allocation2 + $0xa0] ss:$8 sps:$4 sm:$0xff]  }
  0x2f   :  { %506 = vmatprep.mubr.bf16.mxu0 %v935_v14  ;;  %v1142_v24 = vld [vmem:[#allocation2 + $0xb4] ss:$8 sps:$4 sm:$0xff]   ;;  %v1144_v25 = vld [vmem:[#allocation2 + $0xb0] ss:$8 sps:$4 sm:$0xff]   ;;  %v1145_v26 = vld [vmem:[#allocation2 + $0xc4] ss:$8 sps:$4 sm:$0xff]  }
  0x30   :  { %v1209_v27 = vld [vmem:[#allocation5 + $0x40] sm:$0xff]   ;;  %v1148_v30 = vld [vmem:[#allocation2 + $0xd4] ss:$8 sps:$4 sm:$0xff]   ;;  %v1211_v31 = vld [vmem:[#allocation5 + $0x48] sm:$0xff]   ;;  %vm873_vm1 = vcmask 261120   ;;  %s1315_s18 = smov [#allocation7]  }
  0x31   :  { %479 = vmatpush1.bf16.msra.mxu0 %v1117_v5  ;;  %v1147_v28 = vld [vmem:[#allocation2 + $0xc0] ss:$8 sps:$4 sm:$0xff]   ;;  %1032 = vmatprep.subr.bf16.mxu1 %v1209_v27  ;;  %v1213_v33 = vld [vmem:[#allocation5 + $0x50] sm:$0xff]   ;;  %v1151_v35 = vld [vmem:[#allocation2 + $0xe4] ss:$8 sps:$4 sm:$0xff]  }
  0x32   :  { %480 = vmatprep.subr.bf16.mxu0 %v1118_v6  ;;  %v1210_v29 = vld [vmem:[#allocation5] sm:$0xff]   ;;  %v1212_v32 = vld [vmem:[#allocation5 + $0x8] sm:$0xff]   ;;  %v1150_v34 = vld [vmem:[#allocation2 + $0xd0] ss:$8 sps:$4 sm:$0xff]  }
  0x33   :  { %1033 = vmatpush3.bf16.msra.mxu1 %v1210_v29  ;;  %v1214_v36 = vld [vmem:[#allocation5 + $0x10] sm:$0xff]   ;;  %v1215_v37 = vld [vmem:[#allocation5 + $0x58] sm:$0xff]   ;;  %v1153_v38 = vld [vmem:[#allocation2 + $0xe0] ss:$8 sps:$4 sm:$0xff]  }
  0x34   :  { %1034 = vmatprep.subr.bf16.mxu1 %v1211_v31  ;;  %v1154_v39 = vld [vmem:[#allocation2 + $0xf4] ss:$8 sps:$4 sm:$0xff]   ;;  %v1217_v41 = vld [vmem:[#allocation5 + $0x60] sm:$0xff]   ;;  %v1156_v42 = vld [vmem:[#allocation2 + $0xf0] ss:$8 sps:$4 sm:$0xff]  }
  0x35   :  { %481 = vmatpush1.bf16.msra.mxu0 %v1120_v7  ;;  %v1216_v40 = vld [vmem:[#allocation5 + $0x18] sm:$0xff]   ;;  %v1218_v43 = vld [vmem:[#allocation5 + $0x20] sm:$0xff]   ;;  %v1400_v45 = vld [vmem:[%s1462_s0 + $0x8] sm:$0xff] }
  0x36   :  { %482 = vmatprep.subr.bf16.mxu0 %v1121_v8  ;;  %v1161_v44 = vld [vmem:[#allocation2 + $0x104] ss:$8 sps:$4 sm:$0xff]   ;;  %v1159_v47 = vld [vmem:[#allocation2 + $0x100] ss:$8 sps:$4 sm:$0xff]   ;;  %v1164_v49 = vld [vmem:[#allocation2 + $0x114] ss:$8 sps:$4 sm:$0xff]   ;;  %v937_v51 = vcombine.high %v1400_v45, %v1400_v45 }
  0x37   :  { %1035 = vmatpush3.bf16.msra.mxu1 %v1212_v32  ;;  %v1219_v46 = vld [vmem:[#allocation5 + $0x68] sm:$0xff]   ;;  %v1162_v52 = vld [vmem:[#allocation2 + $0x110] ss:$8 sps:$4 sm:$0xff]   ;;  %v1170_v55 = vld [vmem:[#allocation2 + $0x134] ss:$8 sps:$4 sm:$0xff]  }
  0x38   :  { %1036 = vmatprep.subr.bf16.mxu1 %v1213_v33  ;;  %v1220_v50 = vld [vmem:[#allocation5 + $0x28] sm:$0xff]   ;;  %v1168_v56 = vld [vmem:[#allocation2 + $0x130] ss:$8 sps:$4 sm:$0xff]   ;;  %v1176_v59 = vld [vmem:[#allocation2 + $0x154] ss:$8 sps:$4 sm:$0xff]  }
  0x39   :  { %483 = vmatpush1.bf16.msra.mxu0 %v1123_v9  ;;  %v1167_v53 = vld [vmem:[#allocation2 + $0x124] ss:$8 sps:$4 sm:$0xff]   ;;  %v1165_v54 = vld [vmem:[#allocation2 + $0x120] ss:$8 sps:$4 sm:$0xff]   ;;  %v1174_v60 = vld [vmem:[#allocation2 + $0x150] ss:$8 sps:$4 sm:$0xff]  }
  0x3a   :  { %484 = vmatprep.subr.bf16.mxu0 %v1124_v10  ;;  %v1173_v57 = vld [vmem:[#allocation2 + $0x144] ss:$8 sps:$4 sm:$0xff]   ;;  %v1171_v58 = vld [vmem:[#allocation2 + $0x140] ss:$8 sps:$4 sm:$0xff]   ;;  %v1182_v63 = vld [vmem:[#allocation2 + $0x174] ss:$8 sps:$4 sm:$0xff]  }
  0x3b   :  { %1037 = vmatpush3.bf16.msra.mxu1 %v1214_v36  ;;  %v1179_v61 = vld [vmem:[#allocation2 + $0x164] ss:$8 sps:$4 sm:$0xff]   ;;  %v1177_v62 = vld [vmem:[#allocation2 + $0x160] ss:$8 sps:$4 sm:$0xff]   ;;  %v1180_v0 = vld [vmem:[#allocation2 + $0x170] ss:$8 sps:$4 sm:$0xff]  }
  0x3c   :  { %1038 = vmatprep.subr.bf16.mxu1 %v1215_v37  ;;  %v1185_v1 = vld [vmem:[#allocation2 + $0x184] ss:$8 sps:$4 sm:$0xff]   ;;  %v1183_v2 = vld [vmem:[#allocation2 + $0x180] ss:$8 sps:$4 sm:$0xff]   ;;  %v1188_v3 = vld [vmem:[#allocation2 + $0x194] ss:$8 sps:$4 sm:$0xff]  }
  0x3d   :  { %485 = vmatpush1.bf16.msra.mxu0 %v1126_v11  ;;  %v1186_v4 = vld [vmem:[#allocation2 + $0x190] ss:$8 sps:$4 sm:$0xff]   ;;  %v1191_v5 = vld [vmem:[#allocation2 + $0x1a4] ss:$8 sps:$4 sm:$0xff]   ;;  %v1189_v6 = vld [vmem:[#allocation2 + $0x1a0] ss:$8 sps:$4 sm:$0xff]  }
  0x3e   :  { %486 = vmatprep.subr.bf16.mxu0 %v1127_v12  ;;  %v1194_v7 = vld [vmem:[#allocation2 + $0x1b4] ss:$8 sps:$4 sm:$0xff]   ;;  %v1192_v8 = vld [vmem:[#allocation2 + $0x1b0] ss:$8 sps:$4 sm:$0xff]   ;;  %v1197_v9 = vld [vmem:[#allocation2 + $0x1c4] ss:$8 sps:$4 sm:$0xff]  }
  0x3f   :  { %1039 = vmatpush3.bf16.msra.mxu1 %v1216_v40  ;;  %v1195_v10 = vld [vmem:[#allocation2 + $0x1c0] ss:$8 sps:$4 sm:$0xff]   ;;  %v1200_v11 = vld [vmem:[#allocation2 + $0x1d4] ss:$8 sps:$4 sm:$0xff]   ;;  %v1198_v12 = vld [vmem:[#allocation2 + $0x1d0] ss:$8 sps:$4 sm:$0xff]  }
  0x40   :  { %1040 = vmatprep.subr.bf16.mxu1 %v1217_v41  ;;  %v1203_v13 = vld [vmem:[#allocation2 + $0x1e4] ss:$8 sps:$4 sm:$0xff]   ;;  %v1201_v14 = vld [vmem:[#allocation2 + $0x1e0] ss:$8 sps:$4 sm:$0xff]  }
  0x41   :  { %487 = vmatpush1.bf16.msra.mxu0 %v1129_v15  ;;  %v1206_v15 = vld [vmem:[#allocation2 + $0x1f4] ss:$8 sps:$4 sm:$0xff]   ;;  %v1226_v41 = vld [vmem:[%s1467_s5 + $0x8] sm:$0xff]  }
  0x42   :  { %488 = vmatprep.subr.bf16.mxu0 %v1130_v16  ;;  %v1204_v16 = vld [vmem:[#allocation2 + $0x1f0] ss:$8 sps:$4 sm:$0xff]  }
  0x43   :  { %1041 = vmatpush3.bf16.msra.mxu1 %v1218_v43  ;;  %v1228_v43 = vld [vmem:[%s1467_s5 + $0x18] sm:$0xff]  }
  0x44   :  { %1042 = vmatprep.subr.bf16.mxu1 %v1219_v46  ;;  %v1231_v46 = vld [vmem:[%s1467_s5 + $0x30] sm:$0xff]  }
  0x45   :  { %489 = vmatpush1.bf16.msra.mxu0 %v1132_v17  ;;  %v936_v17 = vcombine.low %v1400_v45, %v1400_v45  ;;  %v1230_v45 = vld [vmem:[%s1467_s5 + $0x28] sm:$0xff]  }
  0x46   :  { %490 = vmatprep.subr.bf16.mxu0 %v1133_v18  ;;  %v1221_v18 = vld [vmem:[#allocation5 + $0x70] sm:$0xff]  }
  0x47   :  { %1043 = vmatpush3.bf16.msra.mxu1 %v1220_v50 }
  0x48   :  { %1044 = vmatprep.subr.bf16.mxu1 %v1221_v18 }
  0x49   :  { %491 = vmatpush1.bf16.msra.mxu0 %v1135_v19  ;;  %v1222_v19 = vld [vmem:[#allocation5 + $0x30] sm:$0xff]  }
  0x4a   :  { %492 = vmatprep.subr.bf16.mxu0 %v1136_v20  ;;  %v1223_v20 = vld [vmem:[#allocation5 + $0x78] sm:$0xff]  }
  0x4b   :  { %1045 = vmatpush3.bf16.msra.mxu1 %v1222_v19 }
  0x4c   :  { %1046 = vmatprep.subr.bf16.mxu1 %v1223_v20 }
  0x4d   :  { %493 = vmatpush1.bf16.msra.mxu0 %v1138_v21  ;;  %v1224_v21 = vld [vmem:[#allocation5 + $0x38] sm:$0xff]  }
  0x4e   :  { %494 = vmatprep.subr.bf16.mxu0 %v1139_v22  ;;  %v1313_v22 = vmov 0.0  }
  0x4f   :  { %1047 = vmatpush3.bf16.msra.mxu1 %v1224_v21 }
  0x50   :  { %1066 = vmatprep.subr.bf16.mxu1 %v1313_v22 }
  0x51   :  { %495 = vmatpush1.bf16.msra.mxu0 %v1141_v23  ;;  %v130_v23 = vlaneseq }
  0x52   :  { %496 = vmatprep.subr.bf16.mxu0 %v1142_v24 }
  0x53   :  { %v131_v24 = vshrl.u32 %v130_v23, 7 }
  0x55   :  { %497 = vmatpush1.bf16.msra.mxu0 %v1144_v25  ;;  %v132_v25 = vsub.s32 0, %v131_v24  ;;  %v136_v27 = vsub.s32 1, %v131_v24 }
  0x56   :  { %498 = vmatprep.subr.bf16.mxu0 %v1145_v26  ;;  %v128_v26 = vld [vmem:[%s1464_s2] sm:$0x3] }
  0x57   :  { %v137_v29 = vrot.slane %v128_v26, %v136_v27 }
  0x59   :  { %499 = vmatpush1.bf16.msra.mxu0 %v1147_v28  ;;  %v133_v28 = vrot.slane %v128_v26, %v132_v25 }
  0x5a   :  { %500 = vmatprep.subr.bf16.mxu0 %v1148_v30 }
  0x5d   :  { %501 = vmatpush1.bf16.msra.mxu0 %v1150_v34 }
  0x5e   :  { %502 = vmatprep.subr.bf16.mxu0 %v1151_v35 }
  0x61   :  { %503 = vmatpush1.bf16.msra.mxu0 %v1153_v38 }
  0x62   :  { %504 = vmatprep.subr.bf16.mxu0 %v1154_v39  ;;  %v1225_v39 = vld [vmem:[%s1467_s5] sm:$0xff]  }
  0x65   :  { %505 = vmatpush1.bf16.msra.mxu0 %v1156_v42  ;;  %v1227_v42 = vld [vmem:[%s1467_s5 + $0x10] sm:$0xff]  }
  0x66   :  { %515 = vmatprep.subr.bf16.mxu0 %v1161_v44  ;;  %v1229_v44 = vld [vmem:[%s1467_s5 + $0x20] sm:$0xff]  }
  0x68   :  { %507 = vmatmul.mubr.bf16.vlgmr.msra.gmra.mrb[0].mxu0 %v934_v48 }
  0x69   :  { %516 = vmatpush1.bf16.msra.mxu0 %v1159_v47  ;;  %547 = vmatprep.mubr.bf16.mxu0 %v937_v51  ;;  %v1232_v47 = vld [vmem:[%s1467_s5 + $0x38] sm:$0xff]  }
  0x6a   :  { %517 = vmatprep.subr.bf16.mxu0 %v1164_v49  ;;  %v1002_v49 = vld [vmem:[%s1466_s4] ss:$0 sm:$0xff] }
  0x6d   :  { %518 = vmatpush1.bf16.msra.mxu0 %v1162_v52 }
  0x6e   :  { %519 = vmatprep.subr.bf16.mxu0 %v1167_v53 }
  0x71   :  { %520 = vmatpush1.bf16.msra.mxu0 %v1165_v54 }
  0x72   :  { %521 = vmatprep.subr.bf16.mxu0 %v1170_v55 }
  0x75   :  { %522 = vmatpush1.bf16.msra.mxu0 %v1168_v56  ;;  %v1233_v56 = vld [vmem:[%s1469_s7] sm:$0xff]  }
  0x76   :  { %523 = vmatprep.subr.bf16.mxu0 %v1173_v57 }
  0x79   :  { %524 = vmatpush1.bf16.msra.mxu0 %v1171_v58  ;;  %v1234_v58 = vld [vmem:[%s1469_s7 + $0x8] sm:$0xff]   ;;  %s924_s7 = sshll.u32 %s1315_s18, 4  ;;  %s925_s7 = int_to_ptr.vmem [resolvable:$true] %s924_s7 }
  0x7a   :  { %525 = vmatprep.subr.bf16.mxu0 %v1176_v59  ;;  %v1019_v59 = vld [vmem:[%s1468_s6] ss:$0 sm:$0xff]  ;;  %s1279_s6 = scalar_lea.vmem %s925_s7, 128  ;;  %p1284_p3 = scmp.lt.s32.totalorder %s925_s7, %s925_s7 }
  0x7b   :  { %p1280_p2 = scmp.ne.s32.totalorder %s925_s7, %s1279_s6  ;;  %p1285_p4 = scmp.lt.s32.totalorder %s1279_s6, %s1279_s6 }
  0x7d   :  { %526 = vmatpush1.bf16.msra.mxu0 %v1174_v60  ;;  %p1286_p5 = por %p1285_p4, %p1284_p3 }
  0x7e   :  { %527 = vmatprep.subr.bf16.mxu0 %v1179_v61 }
  0x7f   :  { %p1287_p6 = pnand %p1286_p5, %p1280_p2 }
  0x81   :  { %528 = vmatpush1.bf16.msra.mxu0 %v1177_v62 }
  0x82   :  { %529 = vmatprep.subr.bf16.mxu0 %v1182_v63 }
  0x85   :  { %530 = vmatpush1.bf16.msra.mxu0 %v1180_v0 }
  0x86   :  { %531 = vmatprep.subr.bf16.mxu0 %v1185_v1 }
  0x89   :  { %532 = vmatpush1.bf16.msra.mxu0 %v1183_v2 }
  0x8a   :  { %533 = vmatprep.subr.bf16.mxu0 %v1188_v3  ;;  %v1028_v3 = vld [vmem:[%s1470_s8] ss:$0 sm:$0xff] }
  0x8d   :  { %534 = vmatpush1.bf16.msra.mxu0 %v1186_v4 }
  0x8e   :  { %535 = vmatprep.subr.bf16.mxu0 %v1191_v5 }
  0x91   :  { %536 = vmatpush1.bf16.msra.mxu0 %v1189_v6 }
  0x92   :  { %537 = vmatprep.subr.bf16.mxu0 %v1194_v7 }
  0x95   :  { %538 = vmatpush1.bf16.msra.mxu0 %v1192_v8 }
  0x96   :  { %539 = vmatprep.subr.bf16.mxu0 %v1197_v9 }
  0x99   :  { %540 = vmatpush1.bf16.msra.mxu0 %v1195_v10 }
  0x9a   :  { %541 = vmatprep.subr.bf16.mxu0 %v1200_v11 }
  0x9d   :  { %542 = vmatpush1.bf16.msra.mxu0 %v1198_v12 }
  0x9e   :  { %543 = vmatprep.subr.bf16.mxu0 %v1203_v13 }
  0xa1   :  { %544 = vmatpush1.bf16.msra.mxu0 %v1201_v14 }
  0xa2   :  { %545 = vmatprep.subr.bf16.mxu0 %v1206_v15 }
  0xa5   :  { %546 = vmatpush1.bf16.msra.mxu0 %v1204_v16 }
  0xa8   :  { %548 = vmatmul.mubr.bf16.vlgmr.msra.gmra.mrb[0].mxu0 %v936_v17 }
 0x17b   :  { %v549_v30 = vpop.f32.mrb[0].mxu0 }
 0x17c   :  { %v1094_v31 = vadd.f32 %v549_v30, %v133_v28  ;;  %v551_v32 = vpop.f32.mrb[1].mxu0 }
 0x17d   :  { %v1095_v33 = vadd.f32 %v551_v32, %v137_v29  ;;  %v553_v34 = vpop.f32.mrb[2].mxu0 }
 0x17e   :  { %v556_v35 = vmax.f32 %v1094_v31, 0.0  ;;  %v554_v36 = vpop.f32.mrb[3].mxu0 }
 0x17f   :  { %v557_v37 = vmax.f32 %v1095_v33, 0.0 }
 0x180   :  { %v558_v40 = vpack.c.bf16 %v556_v35, %v556_v35 }
 0x181   :  { %v559_v38 = vpack.c.bf16 %v557_v37, %v557_v37 }
 0x183   :  { %727 = vmatprep.mubr.bf16.mxu1 %v559_v38 }
 0x184   :  { %728 = vmatmul.mubr.bf16.vlgmr.msra.gmra.mrb[0].mxu1 %v558_v40 }
 0x185   :  { %1067 = vmatpush3.bf16.msra.mxu1 %v1225_v39  ;;  %1082 = vmatprep.mubr.msk.bf16.mxu1 %vm1314_vm0, %v1313_v22 }
 0x186   :  { %1068 = vmatprep.subr.bf16.mxu1 %v1313_v22 }
 0x189   :  { %1069 = vmatpush3.bf16.msra.mxu1 %v1226_v41 }
 0x18a   :  { %1070 = vmatprep.subr.bf16.mxu1 %v1313_v22 }
 0x18d   :  { %1071 = vmatpush3.bf16.msra.mxu1 %v1227_v42 }
 0x18e   :  { %1072 = vmatprep.subr.bf16.mxu1 %v1313_v22 }
 0x191   :  { %1073 = vmatpush3.bf16.msra.mxu1 %v1228_v43 }
 0x192   :  { %1074 = vmatprep.subr.bf16.mxu1 %v1313_v22 }
 0x195   :  { %1075 = vmatpush3.bf16.msra.mxu1 %v1229_v44 }
 0x196   :  { %1076 = vmatprep.subr.bf16.mxu1 %v1313_v22 }
 0x199   :  { %1077 = vmatpush3.bf16.msra.mxu1 %v1230_v45 }
 0x19a   :  { %1078 = vmatprep.subr.bf16.mxu1 %v1313_v22 }
 0x19d   :  { %1079 = vmatpush3.bf16.msra.mxu1 %v1231_v46 }
 0x19e   :  { %1080 = vmatprep.subr.bf16.mxu1 %v1313_v22 }
 0x1a1   :  { %1081 = vmatpush3.bf16.msra.mxu1 %v1232_v47 }
 0x1a2   :  { %1086 = vmatprep.subr.bf16.mxu1 %v1313_v22 }
 0x257   :  { %v1048_v48 = vpop.f32.mrb[0].mxu1 }
 0x258   :  { %v1049_v50 = vpop.f32.mrb[1].mxu1 }
 0x259   :  { %v1050_v51 = vadd.f32 %v1049_v50, %v1048_v48  ;;  %v1051_v52 = vpop.f32.mrb[2].mxu1 }
 0x25a   :  { %v1052_v53 = vpop.f32.mrb[3].mxu1 }
 0x25b   :  { %v730_v54 = vadd.f32 %v1050_v51, %v1002_v49 }
 0x25d   :  { %v735_v55 = vmax.f32 %v730_v54, 0.0 }
 0x25f   :  { %v736_v57 = vpack.c.bf16 %v735_v55, %v735_v55 }
 0x261   :  { %1083 = vmatmul.mubr.bf16.vlgmr.msra.gmra.mrb[4].mxu1 %v736_v57 }
 0x262   :  { %1087 = vmatpush3.bf16.msra.mxu1 %v1233_v56  ;;  %1090 = vmatprep.mubr.msk.bf16.mxu1 %vm1314_vm0, %v1313_v22 }
 0x263   :  { %1088 = vmatprep.subr.bf16.mxu1 %v1313_v22 }
 0x266   :  { %1089 = vmatpush3.bf16.msra.mxu1 %v1234_v58 }
 0x334   :  { %v842_v60 = vpop.f32.mrb[4].mxu1 }
 0x335   :  { %v843_v61 = vadd.f32 %v1019_v59, %v842_v60  ;;  %v1084_v62 = vpop.f32.mrb[5].mxu1 }
 0x336   :  { %v845_v63 = vpop.f32.mrb[6].mxu1 }
 0x337   :  { %v848_v0 = vmax.f32 %v843_v61, 0.0  ;;  %v1085_v1 = vpop.f32.mrb[7].mxu1 }
 0x339   :  { %v849_v2 = vpack.c.bf16 %v848_v0, %v848_v0 }
 0x33b   :  { %1091 = vmatmul.mubr.msk.bf16.vlgmr.msra.gmra.mrb[8].mxu1 %vm873_vm1, %v849_v2 }
 0x40e   :  { %v911_v4 = vpop.f32.mrb[8].mxu1 }
 0x40f   :  { %v912_v5 = vadd.f32 %v1028_v3, %v911_v4  ;;  %v1092_v6 = vpop.f32.mrb[9].mxu1 }
 0x410   :  { %v914_v7 = vpop.f32.mrb[10].mxu1 }
 0x411   :  { %917 = vst [vmem:[#allocation7] sm:$0xff] %v912_v5  ;;  %v1093_v8 = vpop.f32.mrb[11].mxu1 }
 0x412   :  { %1290 = shalt.err (!%p1287_p6)
}
 0x413   :  { %s1291_s8 = scalar_lea.hbm %s1471_s9, 128 }
 0x414   :  { %p1292_p7 = scmp.ne.s32.totalorder %s1471_s9, %s1291_s8  ;;  %p1295_p8 = scmp.lt.u32.totalorder %s1291_s8, %s1471_s9 }
 0x416   :  { %p1297_p9 = pnand %p1295_p8, %p1292_p7 }
 0x418   :  { %1300 = shalt.err (!%p1297_p9)
}
 0x419   :  { %927 = dma.vmem_to_hbm [thread:$0]  %s925_s7, 128, %s1471_s9, [#allocation4]  }
 0x41a   :  { %1305 = dma.done.wait [#allocation4], 128  }
 0x41b   :  { %1306 = vsyncadd [#allocation4], 4294967168 }
 0x41c   :  { %931 = vsyncpa [#allocation3], 1 }
 0x41d   :  { %932 = vsyncpa [#allocation6], 1 }
 0x41e   :  { %933 = vsyncpa [#allocation4], 1 }

</bundles_post_ra>
